<compile_context>
chip_gen: v7x
topology: tpu7x:2x2x1
jax: 0.10.0
libtpu: 0.0.40
codegen_flags: <defaults>
</compile_context>

<pallas_src>
import functools

import jax
import jax.numpy as jnp
from jax.experimental import pallas as pl
from jax.experimental.pallas import tpu as pltpu


def _learnable_sigmoid_kernel(x_ref, slope_ref, o_ref, *, beta):
    # x_ref: (tile_rows, L), slope_ref: (1, L) -> broadcast over rows.
    x = x_ref[...]
    slope = slope_ref[...]
    o_ref[...] = (beta * jax.nn.sigmoid(slope * x)).astype(o_ref.dtype)


def _round_up(n, m):
    return ((n + m - 1) // m) * m


def learnable_sigmoid(x, slope, beta=1.0, *, tile_rows=1024):
    """x: (..., F); slope: (F,). Returns beta * sigmoid(slope * x)."""
    orig_shape = x.shape
    F = orig_shape[-1]
    assert slope.shape == (F,)

    x2 = x.reshape(-1, F)  # (R, F)
    R = x2.shape[0]

    # --- choose a lane-dense layout -------------------------------------
    if F < 128 and 128 % F == 0 and R % (128 // F) == 0:
        # Fold several narrow rows into one 128-lane row. The slope pattern
        # repeats every F lanes, so results are bit-identical.
        fold = 128 // F
        lanes = 128
        rows = (R * F) // 128
        x2 = x2.reshape(rows, lanes)
        slope2 = jnp.tile(slope, fold).reshape(1, lanes)
    else:
        # F >= 128 (ideally a multiple of 128) or un-foldable shape:
        # keep (R, F); block last dim == full array dim is always legal.
        lanes = F
        rows = R
        slope2 = slope.reshape(1, F)

    # --- tile size: big blocks, multiple of 8 sublanes, no host-side pad --
    tile = min(int(tile_rows), _round_up(rows, 8))
    tile = max(_round_up(tile, 8), 8)
    grid = (pl.cdiv(rows, tile),)  # ragged last block handled by Pallas

    out = pl.pallas_call(
        functools.partial(_learnable_sigmoid_kernel, beta=float(beta)),
        out_shape=jax.ShapeDtypeStruct((rows, lanes), x.dtype),
        grid_spec=pltpu.PrefetchScalarGridSpec(
            num_scalar_prefetch=0,
            grid=grid,
            in_specs=[
                pl.BlockSpec((tile, lanes), lambda i: (i, 0)),
                pl.BlockSpec((1, lanes), lambda i: (0, 0)),
            ],
            out_specs=pl.BlockSpec((tile, lanes), lambda i: (i, 0)),
        ),
        compiler_params=pltpu.CompilerParams(
            dimension_semantics=("parallel",),
            vmem_limit_bytes=64 << 20,  # headroom if tile_rows is tuned up
        ),
    )(x2, slope2)

    return out.reshape(orig_shape)


if __name__ == "__main__":
    key = jax.random.PRNGKey(0)
    B, T, F = 2, 8, 32          # in_features = 32
    beta = 1.0

    kx, ks = jax.random.split(key)
    x = jax.random.normal(kx, (B, T, F), dtype=jnp.float32)
    # Deterministic parameter init: nn.Parameter(torch.ones(in_features))
    slope = jnp.ones((F,), dtype=jnp.float32)

    y = learnable_sigmoid(x, slope, beta=beta)
    y = jax.block_until_ready(y)

    ref = beta * jax.nn.sigmoid(slope * x)
    assert y.shape == x.shape
    assert jnp.allclose(y, ref, atol=1e-6, rtol=1e-6)

    # Extra check: non-uniform slope exercises the lane-packed slope tiling,
    # and a ragged row count exercises the unpacked / masked-last-block path.
    slope2 = jax.random.normal(ks, (F,), dtype=jnp.float32)
    y2 = jax.block_until_ready(learnable_sigmoid(x, slope2, beta=0.5))
    assert jnp.allclose(y2, 0.5 * jax.nn.sigmoid(slope2 * x), atol=1e-6, rtol=1e-6)

    x3 = jax.random.normal(kx, (3, 5, F), dtype=jnp.float32)  # R=15, not foldable
    y3 = jax.block_until_ready(learnable_sigmoid(x3, slope2, beta=beta))
    assert jnp.allclose(y3, beta * jax.nn.sigmoid(slope2 * x3), atol=1e-6, rtol=1e-6)

    print("KERNEL_OK")
</pallas_src>

<mosaic_0001>
module attributes {stable_mosaic.version = 11 : i64} {
  func.func @_learnable_sigmoid_kernel(%arg0: i32, %arg1: memref<8x128xf32, #tpu.memory_space<vmem>>, %arg2: memref<1x128xf32, #tpu.memory_space<vmem>>, %arg3: memref<8x128xf32, #tpu.memory_space<vmem>>) attributes {dimension_semantics = [#tpu.dimension_semantics<parallel>], iteration_bounds = array<i64: 1>, scalar_prefetch = 0 : i64, scratch_operands = 0 : i64, tpu.core_type = #tpu.core_type<tc>, window_params = [{transform_indices = @transform_0, window_bounds = array<i64: 8, 128>}, {pipeline_mode = #tpu.pipeline_mode<synchronous>, transform_indices = @transform_1, window_bounds = array<i64: 1, 128>}, {transform_indices = @transform_2, window_bounds = array<i64: 8, 128>}]} {
    %c0 = arith.constant 0 : index
    %c0_0 = arith.constant 0 : index
    %0 = vector.load %arg1[%c0, %c0_0] : memref<8x128xf32, #tpu.memory_space<vmem>>, vector<8x128xf32>
    %c0_1 = arith.constant 0 : index
    %c0_2 = arith.constant 0 : index
    %1 = vector.load %arg2[%c0_1, %c0_2] : memref<1x128xf32, #tpu.memory_space<vmem>>, vector<1x128xf32>
    %2 = vector.broadcast %1 : vector<1x128xf32> to vector<8x128xf32>
    %3 = arith.mulf %2, %0 : vector<8x128xf32>
    %4 = arith.negf %3 : vector<8x128xf32>
    %5 = math.exp %4 : vector<8x128xf32>
    %cst = arith.constant 1.000000e+00 : f32
    %6 = vector.broadcast %cst : f32 to vector<8x128xf32>
    %7 = arith.addf %6, %5 : vector<8x128xf32>
    %8 = arith.divf %6, %7 : vector<8x128xf32>
    %cst_3 = arith.constant 1.000000e+00 : f32
    %9 = vector.broadcast %cst_3 : f32 to vector<8x128xf32>
    %10 = arith.mulf %9, %8 : vector<8x128xf32>
    %c0_4 = arith.constant 0 : index
    %c0_5 = arith.constant 0 : index
    %11 = vector.load %arg3[%c0_4, %c0_5] : memref<8x128xf32, #tpu.memory_space<vmem>>, vector<8x128xf32>
    tpu.vector_store %arg3[%c0_4, %c0_5], %10 {strides = array<i32>} : memref<8x128xf32, #tpu.memory_space<vmem>>, vector<8x128xf32>,
    return
  }
  func.func @transform_0(%arg0: i32) -> (i32, i32) {
    %c0_i32 = arith.constant 0 : i32
    %c0_i32_0 = arith.constant 0 : i32
    return %arg0, %c0_i32 : i32, i32
  }
  func.func @transform_1(%arg0: i32) -> (i32, i32) {
    %c0_i32 = arith.constant 0 : i32
    %c0_i32_0 = arith.constant 0 : i32
    %c0_i32_1 = arith.constant 0 : i32
    return %c0_i32, %c0_i32_0 : i32, i32
  }
  func.func @transform_2(%arg0: i32) -> (i32, i32) {
    %c0_i32 = arith.constant 0 : i32
    %c0_i32_0 = arith.constant 0 : i32
    return %arg0, %c0_i32 : i32, i32
  }
}

</mosaic_0001>

<bundles_post_ra>
// kernel: tpu_custom_call.1
= control target key start
LH: loop header
LB: loop body
LE: loop exit
PB: predicated region body
PF: predicated region fallthrough
CT: control target
= control target key end

     0   :  { %7 = vsyncpa [#allocation3], 0  ;;  %s217_s0 = inlined_call_operand.hbm [shape: f32[4,128], index: 0, kind: input, shape index: {}]   ;;  %s218_s1 = inlined_call_operand.hbm [shape: f32[1,128], index: 1, kind: input, shape index: {}]   ;;  %s219_s2 = inlined_call_operand.hbm [shape: f32[4,128], index: 2, kind: output, shape index: {}]  }
   0x1   :  { %8 = vsyncpa [#allocation6], 0 }
   0x2   :  { %9 = vsyncpa [#allocation4], 0 }
   0x3   :  { %14 = vsyncadd [#allocation3], 64  ;;  %s155_s9 = smov [#allocation2]   ;;  %s83_s13 = scalar_lea.hbm %s217_s0, 64 }
   0x4   :  { %s15_s10 = sshll.u32 %s155_s9, 4  ;;  %p84_p0 = scmp.ne.s32.totalorder %s217_s0, %s83_s13  ;;  %s16_s10 = int_to_ptr.vmem [resolvable:$true] %s15_s10 }
   0x5   :  { %p87_p1 = scmp.lt.u32.totalorder %s83_s13, %s217_s0 }
   0x7   :  { %p89_p2 = pnand %p87_p1, %p84_p0 }
   0x9   :  { %92 = shalt.err (!%p89_p2)
}
   0xa   :  { %s93_s18 = scalar_lea.vmem %s16_s10, 64  ;;  %s97_s19 = scalar_lea.vmem %s16_s10, 128 }
   0xb   :  { %p94_p3 = scmp.ne.s32.totalorder %s16_s10, %s93_s18  ;;  %p98_p4 = scmp.lt.s32.totalorder %s16_s10, %s16_s10 }
   0xc   :  { %p99_p5 = scmp.lt.s32.totalorder %s97_s19, %s93_s18 }
   0xe   :  { %p100_p6 = por %p99_p5, %p98_p4 }
  0x10   :  { %p101_p7 = pnand %p100_p6, %p94_p3 }
  0x12   :  { %104 = shalt.err (!%p101_p7)
}
  0x13   :  { %s156_s20 = smov 64   ;;  %s157_s21 = smov 4  }
  0x14   :  { %21 = dma.hbm_to_vmem [thread:$0]  %s217_s0, 64, %s16_s10, [#allocation3], %s156_s20, %s156_s20, %s157_s21  }
  0x15   :  { %s158_s24 = smov [#allocation5]   ;;  %s105_s28 = scalar_lea.hbm %s218_s1, 16 }
  0x16   :  { %s28_s25 = sshll.u32 %s158_s24, 4  ;;  %p106_p8 = scmp.ne.s32.totalorder %s218_s1, %s105_s28  ;;  %s29_s25 = int_to_ptr.vmem [resolvable:$true] %s28_s25 }
  0x17   :  { %p109_p9 = scmp.lt.u32.totalorder %s105_s28, %s218_s1 }
  0x19   :  { %p111_p10 = pnand %p109_p9, %p106_p8 }
  0x1b   :  { %114 = shalt.err (!%p111_p10)
}
  0x1c   :  { %s115_s5 = scalar_lea.vmem %s29_s25, 16  ;;  %s119_s0 = scalar_lea.vmem %s29_s25, 32 }
  0x1d   :  { %p116_p11 = scmp.ne.s32.totalorder %s29_s25, %s115_s5  ;;  %p120_p12 = scmp.lt.s32.totalorder %s29_s25, %s29_s25 }
  0x1e   :  { %p121_p13 = scmp.lt.s32.totalorder %s119_s0, %s115_s5 }
  0x20   :  { %p122_p0 = por %p121_p13, %p120_p12 }
  0x22   :  { %p123_p1 = pnand %p122_p0, %p116_p11 }
  0x24   :  { %126 = shalt.err (!%p123_p1)
}
  0x25   :  { %31 = dma.hbm_to_vmem [thread:$0]  %s218_s1, 16, %s29_s25, [#allocation6]  }
  0x26   :  { %149 = dma.done.wait [#allocation3], 128  }
  0x27   :  { %150 = vsyncadd [#allocation3], 4294967168 }
  0x28   :  { %151 = dma.done.wait [#allocation6], 16  }
  0x29   :  { %152 = vsyncadd [#allocation6], 4294967280  ;;  %v38_v0 = vld [vmem:[#allocation2] sm:$0xff]  ;;  %v72_v1 = vld [vmem:[#allocation5] ss:$0 sm:$0xff] }
  0x2a   :  { %v46_v2 = vmul.f32 %v72_v1, %v38_v0 }
  0x2c   :  { %v73_v3 = vmul.f32 -1.442695, %v46_v2 }
  0x2e   :  { %79 = vpow2.f32 %v73_v3 }
  0x38   :  { %v80_v4 = vpop.eup %79 }
  0x39   :  { %v50_v5 = vadd.f32 1.0, %v80_v4 }
  0x3b   :  { %81 = vrcp.f32 %v50_v5 }
  0x45   :  { %v82_v6 = vpop.eup %81 }
  0x46   :  { %53 = vst [vmem:[#allocation7] sm:$0xff] %v82_v6 }
  0x47   :  { %58 = vsyncadd [#allocation4], 64  ;;  %s159_s8 = smov [#allocation7]  }
  0x48   :  { %s59_s9 = sshll.u32 %s159_s8, 4  ;;  %s60_s9 = int_to_ptr.vmem [resolvable:$true] %s59_s9 }
  0x49   :  { %s127_s10 = scalar_lea.vmem %s60_s9, 64  ;;  %s131_s1 = scalar_lea.vmem %s60_s9, 128 }
  0x4a   :  { %p128_p2 = scmp.ne.s32.totalorder %s60_s9, %s127_s10  ;;  %p132_p3 = scmp.lt.s32.totalorder %s60_s9, %s60_s9 }
  0x4b   :  { %p133_p4 = scmp.lt.s32.totalorder %s131_s1, %s127_s10 }
  0x4d   :  { %p134_p5 = por %p133_p4, %p132_p3 }
  0x4f   :  { %p135_p6 = pnand %p134_p5, %p128_p2 }
  0x51   :  { %138 = shalt.err (!%p135_p6)
}
  0x52   :  { %s139_s13 = scalar_lea.hbm %s219_s2, 64 }
  0x53   :  { %p140_p7 = scmp.ne.s32.totalorder %s219_s2, %s139_s13  ;;  %p143_p8 = scmp.lt.u32.totalorder %s139_s13, %s219_s2 }
  0x55   :  { %p145_p9 = pnand %p143_p8, %p140_p7 }
  0x57   :  { %148 = shalt.err (!%p145_p9)
}
  0x58   :  { %65 = dma.vmem_to_hbm [thread:$0]  %s60_s9, 64, %s219_s2, [#allocation4], %s156_s20, %s156_s20, %s157_s21  }
  0x59   :  { %153 = dma.done.wait [#allocation4], 128  }
  0x5a   :  { %154 = vsyncadd [#allocation4], 4294967168 }
  0x5b   :  { %69 = vsyncpa [#allocation3], 1 }
  0x5c   :  { %70 = vsyncpa [#allocation6], 1 }
  0x5d   :  { %71 = vsyncpa [#allocation4], 1 }

</bundles_post_ra>
